<compile_context>
chip_gen: v6e
topology: v6e:2x2x1
jax: 0.10.0
libtpu: 0.0.40
codegen_flags: <defaults>
</compile_context>

<pallas_src>
import functools

import jax
import jax.numpy as jnp
from jax.experimental import pallas as pl
from jax.experimental.pallas import tpu as pltpu


def _boundary_biaffine_kernel(x1_ref, x2t_ref, w_ref, u_ref, v_ref, out_ref,
                              *, to_block, d2):
    x1 = x1_ref[0]          # (TL1, D1)
    x2t = x2t_ref[0]        # (D2, L2)   -- pre-transposed in wrapper
    w = w_ref[0]            # (D1, TO*D2) effective weights for this o-group
    u = u_ref[0, 0]         # (TL1, TO)  f32, U(x1) hoisted to wrapper
    v = v_ref[0, 0]         # (TO, L2)   f32, V(x2) + all biases, hoisted

    # One wide MXU matmul (fills the MXU N dimension even when D2 < 256).
    t = jnp.dot(x1, w, preferred_element_type=jnp.float32)      # (TL1, TO*D2)

    # Short unrolled loop over the TO output channels of this group.
    for to in range(to_block):
        t_o = t[:, to * d2:(to + 1) * d2]                        # (TL1, D2) static slice
        scores = jnp.dot(t_o.astype(x2t.dtype), x2t,
                         preferred_element_type=jnp.float32)     # (TL1, L2)
        out = scores + u[:, to:to + 1] + v[to:to + 1, :]
        out_ref[0, to] = out.astype(out_ref.dtype)


def _vmem_capacity_bytes():
    try:
        info = pltpu.get_tpu_info()
        cap = getattr(info, "vmem_capacity_bytes", None)
        if cap:
            return int(cap)
    except Exception:
        pass
    return 64 << 20  # conservative: v7x per-TC physical VMEM


def _select_tiles(L1, D1, D2, L2, O, in_isz, out_isz, budget):
    """Pick (TL1, TO) so the double-buffered blocks + intermediates fit VMEM."""
    if L1 <= 128:
        tl1_cands = [L1]                       # single full-dim tile
    elif L1 % 256 == 0:
        tl1_cands = [256, 128]
    else:
        tl1_cands = [128]
    to_cands = [d for d in range(min(O, 16), 0, -1) if O % d == 0]

    def need(tl1, to):
        blocks = 2 * (tl1 * D1 * in_isz            # x1 tile
                      + D2 * L2 * in_isz           # x2^T
                      + D1 * to * D2 * in_isz      # weight block
                      + tl1 * to * 4               # U block (f32)
                      + to * L2 * 4                # V block (f32)
                      + to * tl1 * L2 * out_isz)   # output block
        interm = (tl1 * to * D2 + 2 * tl1 * L2) * 4
        return blocks + interm + (2 << 20)         # headroom for Mosaic scratch

    for to in to_cands:          # prefer larger TO (biggest structural lever)
        for tl1 in tl1_cands:    # then larger TL1
            if need(tl1, to) <= budget:
                return tl1, to, need(tl1, to)
    # Nothing fits with full-L2 blocks.
    # TODO(synk): add an L2 tile as an extra grid axis for very long sequences
    # (L2 >= 2048 with large D2 on v7x's 64 MiB VMEM).
    tl1, to = tl1_cands[-1], to_cands[-1]
    return tl1, to, need(tl1, to)


def boundary_biaffine(x1, x2, weight, w_bias, u_weight, u_bias, v_weight, v_bias,
                      *, compute_dtype=None):
    """x1: (N, L1, D1), x2: (N, L2, D2), weight: (D1, D2, O), w_bias: (O,),
    u_weight: (O, D1), u_bias: (O,), v_weight: (O, D2), v_bias: (O,)
    -> (N, L1, L2, O)"""
    N, L1, D1 = x1.shape
    N2, L2, D2 = x2.shape
    assert N == N2, "batch sizes must match"
    O = weight.shape[-1]
    assert weight.shape == (D1, D2, O)
    assert u_weight.shape == (O, D1) and v_weight.shape == (O, D2)

    out_dtype = x1.dtype
    f32 = jnp.float32

    # ---- Hoisted linear terms (tiny matvecs -- keep them off the kernel MXU).
    u_pre = jnp.einsum("nld,od->nlo", x1.astype(f32), u_weight.astype(f32))   # (N,L1,O)
    cbias = (w_bias.astype(f32) + u_bias.astype(f32) + v_bias.astype(f32))    # (O,)
    v_pre = (jnp.einsum("nld,od->nol", x2.astype(f32), v_weight.astype(f32))
             + cbias[None, :, None])                                          # (N,O,L2)

    # ---- MXU inputs (optionally bf16; accumulation stays f32 in-kernel).
    in_dtype = compute_dtype if compute_dtype is not None else x1.dtype
    x1c = x1.astype(in_dtype)
    x2t = jnp.transpose(x2, (0, 2, 1)).astype(in_dtype)       # (N, D2, L2)
    # Flat weight exactly as PyTorch's weight.view(D1, D2*O); columns are
    # channel-major, i.e. columns [o*D2:(o+1)*D2] are W_eff[o].
    w_flat = weight.reshape(D1, D2 * O).astype(in_dtype)

    # ---- Tile selection under a generation-aware VMEM budget.
    in_isz = jnp.dtype(in_dtype).itemsize
    out_isz = jnp.dtype(out_dtype).itemsize
    budget = int(_vmem_capacity_bytes() * 0.85)      # ~54 MiB v7x, ~108 MiB v5e/v6e
    TL1, TO, needed = _select_tiles(L1, D1, D2, L2, O, in_isz, out_isz, budget)
    n_o = O // TO
    L1p = L1 if L1 <= 128 else (-(-L1 // TL1)) * TL1
    n_l1 = L1p // TL1

    if L1p != L1:
        pad = L1p - L1
        x1c = jnp.pad(x1c, ((0, 0), (0, pad), (0, 0)))
        u_pre = jnp.pad(u_pre, ((0, 0), (0, pad), (0, 0)))

    # Blocked operands (one-time, tiny XLA relayouts).
    w_blocked = w_flat.reshape(D1, n_o, TO * D2).transpose(1, 0, 2)     # (n_o, D1, TO*D2)
    u_blocked = u_pre.reshape(N, L1p, n_o, TO).transpose(0, 2, 1, 3)    # (N, n_o, L1p, TO)
    v_blocked = v_pre.reshape(N, n_o, TO, L2)                           # (N, n_o, TO, L2)

    flops = 2 * N * L1p * O * D2 * (D1 + L2)
    bytes_accessed = (n_o * (x1c.size * in_isz + x2t.size * in_isz)     # re-read per o-group
                      + w_blocked.size * in_isz                         # weight read once
                      + u_blocked.size * 4 + v_blocked.size * 4
                      + N * O * L1p * L2 * out_isz)
    cost = pl.CostEstimate(flops=int(flops), transcendentals=0,
                           bytes_accessed=int(bytes_accessed))

    kernel = functools.partial(_boundary_biaffine_kernel, to_block=TO, d2=D2)

    # Grid: o-group slowest (weight block changes least often -> read once),
    # then batch, then L1 tiles.  Every grid point writes a distinct output
    # block, so all axes are parallel (megacore / multi-TC friendly).
    out_chan_first = pl.pallas_call(
        kernel,
        out_shape=jax.ShapeDtypeStruct((N, O, L1p, L2), out_dtype),
        grid=(n_o, N, n_l1),
        in_specs=[
            pl.BlockSpec((1, TL1, D1), lambda og, n, i: (n, i, 0)),        # x1 tile
            pl.BlockSpec((1, D2, L2), lambda og, n, i: (n, 0, 0)),         # x2^T (resident over og, i)
            pl.BlockSpec((1, D1, TO * D2), lambda og, n, i: (og, 0, 0)),   # weight block (slowest axis)
            pl.BlockSpec((1, 1, TL1, TO), lambda og, n, i: (n, og, i, 0)), # U(x1) block
            pl.BlockSpec((1, 1, TO, L2), lambda og, n, i: (n, og, 0, 0)),  # V(x2)+bias block
        ],
        out_specs=pl.BlockSpec((1, TO, TL1, L2), lambda og, n, i: (n, og, i, 0)),
        compiler_params=pltpu.CompilerParams(
            dimension_semantics=("parallel", "parallel", "parallel"),
            vmem_limit_bytes=int(min(budget, max(needed, 16 << 20))),
        ),
        cost_estimate=cost,
    )(x1c, x2t, w_blocked, u_blocked, v_blocked)

    # Module layout (N, L1, L2, O); single relayout done by XLA.
    out = jnp.transpose(out_chan_first, (0, 2, 3, 1))
    if L1p != L1:
        out = out[:, :L1]
    return out


def _reference_forward(x1, x2, weight, w_bias, u_w, u_b, v_w, v_b):
    """Pure-JAX transcription of the PyTorch BoundaryBiaffine forward."""
    N, L1, D1 = x1.shape
    _, L2, D2 = x2.shape
    O = weight.shape[-1]
    inter = x1.reshape(-1, D1) @ weight.reshape(D1, D2 * O)          # mm with weight.view
    inter = inter.reshape(N, L1 * O, D2)
    bil = jnp.einsum("npd,nkd->npk", inter, x2)                      # bmm with x2^T
    bil = bil.reshape(N, L1, O, L2).transpose(0, 1, 3, 2) + w_bias   # (N, L1, L2, O)
    u = x1 @ u_w.T + u_b                                             # (N, L1, O)
    v = x2 @ v_w.T + v_b                                             # (N, L2, O)
    return bil + u[:, :, None, :] + v[:, None, :, :]


def _run_case(key, N, L1, L2, D1, D2, O, scale, atol, rtol):
    k1, k2, kw, kb, ku, kub, kv, kvb = jax.random.split(key, 8)
    x1 = jax.random.normal(k1, (N, L1, D1), dtype=jnp.float32)
    x2 = jax.random.normal(k2, (N, L2, D2), dtype=jnp.float32)
    weight = scale * jax.random.normal(kw, (D1, D2, O), dtype=jnp.float32)
    w_bias = scale * jax.random.normal(kb, (O,), dtype=jnp.float32)
    u_weight = scale * jax.random.normal(ku, (O, D1), dtype=jnp.float32)
    u_bias = scale * jax.random.normal(kub, (O,), dtype=jnp.float32)
    v_weight = scale * jax.random.normal(kv, (O, D2), dtype=jnp.float32)
    v_bias = scale * jax.random.normal(kvb, (O,), dtype=jnp.float32)

    out = boundary_biaffine(x1, x2, weight, w_bias, u_weight, u_bias,
                            v_weight, v_bias)
    out = jax.block_until_ready(out)
    ref = _reference_forward(x1, x2, weight, w_bias, u_weight, u_bias,
                             v_weight, v_bias)
    assert out.shape == (N, L1, L2, O), out.shape
    assert jnp.allclose(out, ref, atol=atol, rtol=rtol), \
        f"mismatch vs reference (max abs diff {jnp.max(jnp.abs(out - ref))})"


if __name__ == "__main__":
    key = jax.random.PRNGKey(0)
    k_small, k_big = jax.random.split(key)

    # Small case: single tiles, whole-O block resident.
    _run_case(k_small, N=2, L1=8, L2=8, D1=32, D2=32, O=16,
              scale=0.1, atol=2e-3, rtol=2e-3)

    # Larger case: exercises TL1=128 tiling, L1 padding (160 -> 256) and the
    # masked final-rows slice.
    _run_case(k_big, N=2, L1=160, L2=128, D1=64, D2=64, O=4,
              scale=0.02, atol=2e-2, rtol=2e-2)

    print("KERNEL_OK")
</pallas_src>

<mosaic_0001>
module attributes {stable_mosaic.version = 11 : i64} {
  func.func @_boundary_biaffine_kernel(%arg0: i32, %arg1: i32, %arg2: i32, %arg3: memref<1x8x32xf32, #tpu.memory_space<vmem>>, %arg4: memref<1x32x8xf32, #tpu.memory_space<vmem>>, %arg5: memref<1x32x512xf32, #tpu.memory_space<vmem>>, %arg6: memref<1x1x8x16xf32, #tpu.memory_space<vmem>>, %arg7: memref<1x1x16x8xf32, #tpu.memory_space<vmem>>, %arg8: memref<1x16x8x8xf32, #tpu.memory_space<vmem>>) attributes {dimension_semantics = [#tpu.dimension_semantics<parallel>, #tpu.dimension_semantics<parallel>, #tpu.dimension_semantics<parallel>], iteration_bounds = array<i64: 1, 2, 1>, scalar_prefetch = 0 : i64, scratch_operands = 0 : i64, tpu.core_type = #tpu.core_type<tc>, window_params = [{transform_indices = @transform_0, window_bounds = array<i64: 1, 8, 32>}, {transform_indices = @transform_1, window_bounds = array<i64: 1, 32, 8>}, {transform_indices = @transform_2, window_bounds = array<i64: 1, 32, 512>}, {transform_indices = @transform_3, window_bounds = array<i64: 1, 1, 8, 16>}, {transform_indices = @transform_4, window_bounds = array<i64: 1, 1, 16, 8>}, {transform_indices = @transform_5, window_bounds = array<i64: 1, 16, 8, 8>}]} {
    %c0 = arith.constant 0 : index
    %c0_0 = arith.constant 0 : index
    %c0_1 = arith.constant 0 : index
    %0 = vector.load %arg3[%c0, %c0_0, %c0_1] : memref<1x8x32xf32, #tpu.memory_space<vmem>>, vector<1x8x32xf32>
    %1 = vector.shape_cast %0 : vector<1x8x32xf32> to vector<8x32xf32>
    %c0_2 = arith.constant 0 : index
    %c0_3 = arith.constant 0 : index
    %c0_4 = arith.constant 0 : index
    %2 = vector.load %arg4[%c0_2, %c0_3, %c0_4] : memref<1x32x8xf32, #tpu.memory_space<vmem>>, vector<1x32x8xf32>
    %3 = vector.shape_cast %2 : vector<1x32x8xf32> to vector<32x8xf32>
    %c0_5 = arith.constant 0 : index
    %c0_6 = arith.constant 0 : index
    %c0_7 = arith.constant 0 : index
    %4 = vector.load %arg5[%c0_5, %c0_6, %c0_7] : memref<1x32x512xf32, #tpu.memory_space<vmem>>, vector<1x32x512xf32>
    %5 = vector.shape_cast %4 : vector<1x32x512xf32> to vector<32x512xf32>
    %c0_8 = arith.constant 0 : index
    %c0_9 = arith.constant 0 : index
    %c0_10 = arith.constant 0 : index
    %c0_11 = arith.constant 0 : index
    %6 = vector.load %arg6[%c0_8, %c0_9, %c0_10, %c0_11] : memref<1x1x8x16xf32, #tpu.memory_space<vmem>>, vector<1x1x8x16xf32>
    %7 = vector.shape_cast %6 : vector<1x1x8x16xf32> to vector<8x16xf32>
    %c0_12 = arith.constant 0 : index
    %c0_13 = arith.constant 0 : index
    %c0_14 = arith.constant 0 : index
    %c0_15 = arith.constant 0 : index
    %8 = vector.load %arg7[%c0_12, %c0_13, %c0_14, %c0_15] : memref<1x1x16x8xf32, #tpu.memory_space<vmem>>, vector<1x1x16x8xf32>
    %9 = vector.shape_cast %8 : vector<1x1x16x8xf32> to vector<16x8xf32>
    %cst = arith.constant dense<0.000000e+00> : vector<8x512xf32>
    %10 = tpu.matmul %1, %5, %cst {dimension_numbers = #tpu.dot_dimension_numbers<[1], [0], [0], [1], [0, 0, 1, 1], [], []>} : vector<8x32xf32>, vector<32x512xf32>, vector<8x512xf32> -> vector<8x512xf32>
    %11 = vector.extract_strided_slice %10 {offsets = [0, 0], sizes = [8, 32], strides = [1, 1]} : vector<8x512xf32> to vector<8x32xf32>
    %cst_16 = arith.constant dense<0.000000e+00> : vector<8x8xf32>
    %12 = tpu.matmul %11, %3, %cst_16 {dimension_numbers = #tpu.dot_dimension_numbers<[1], [0], [0], [1], [0, 0, 1, 1], [], []>} : vector<8x32xf32>, vector<32x8xf32>, vector<8x8xf32> -> vector<8x8xf32>
    %13 = vector.extract_strided_slice %7 {offsets = [0, 0], sizes = [8, 1], strides = [1, 1]} : vector<8x16xf32> to vector<8x1xf32>
    %14 = vector.broadcast %13 : vector<8x1xf32> to vector<8x8xf32>
    %15 = arith.addf %12, %14 : vector<8x8xf32>
    %16 = vector.extract_strided_slice %9 {offsets = [0, 0], sizes = [1, 8], strides = [1, 1]} : vector<16x8xf32> to vector<1x8xf32>
    %17 = vector.broadcast %16 : vector<1x8xf32> to vector<8x8xf32>
    %18 = arith.addf %15, %17 : vector<8x8xf32>
    %c0_17 = arith.constant 0 : index
    %c0_18 = arith.constant 0 : index
    %c0_19 = arith.constant 0 : index
    %c0_20 = arith.constant 0 : index
    %19 = vector.load %arg8[%c0_17, %c0_18, %c0_19, %c0_20] : memref<1x16x8x8xf32, #tpu.memory_space<vmem>>, vector<1x1x8x8xf32>
    %20 = vector.shape_cast %19 : vector<1x1x8x8xf32> to vector<8x8xf32>
    %21 = vector.shape_cast %18 : vector<8x8xf32> to vector<1x1x8x8xf32>
    tpu.vector_store %arg8[%c0_17, %c0_18, %c0_19, %c0_20], %21 {strides = array<i32>} : memref<1x16x8x8xf32, #tpu.memory_space<vmem>>, vector<1x1x8x8xf32>,
    %22 = vector.extract_strided_slice %10 {offsets = [0, 32], sizes = [8, 32], strides = [1, 1]} : vector<8x512xf32> to vector<8x32xf32>
    %cst_21 = arith.constant dense<0.000000e+00> : vector<8x8xf32>
    %23 = tpu.matmul %22, %3, %cst_21 {dimension_numbers = #tpu.dot_dimension_numbers<[1], [0], [0], [1], [0, 0, 1, 1], [], []>} : vector<8x32xf32>, vector<32x8xf32>, vector<8x8xf32> -> vector<8x8xf32>
    %24 = vector.extract_strided_slice %7 {offsets = [0, 1], sizes = [8, 1], strides = [1, 1]} : vector<8x16xf32> to vector<8x1xf32>
    %25 = vector.broadcast %24 : vector<8x1xf32> to vector<8x8xf32>
    %26 = arith.addf %23, %25 : vector<8x8xf32>
    %27 = vector.extract_strided_slice %9 {offsets = [1, 0], sizes = [1, 8], strides = [1, 1]} : vector<16x8xf32> to vector<1x8xf32>
    %28 = vector.broadcast %27 : vector<1x8xf32> to vector<8x8xf32>
    %29 = arith.addf %26, %28 : vector<8x8xf32>
    %c0_22 = arith.constant 0 : index
    %c1 = arith.constant 1 : index
    %c0_23 = arith.constant 0 : index
    %c0_24 = arith.constant 0 : index
    %30 = vector.load %arg8[%c0_22, %c1, %c0_23, %c0_24] : memref<1x16x8x8xf32, #tpu.memory_space<vmem>>, vector<1x1x8x8xf32>
    %31 = vector.shape_cast %30 : vector<1x1x8x8xf32> to vector<8x8xf32>
    %32 = vector.shape_cast %29 : vector<8x8xf32> to vector<1x1x8x8xf32>
    tpu.vector_store %arg8[%c0_22, %c1, %c0_23, %c0_24], %32 {strides = array<i32>} : memref<1x16x8x8xf32, #tpu.memory_space<vmem>>, vector<1x1x8x8xf32>,
    %33 = vector.extract_strided_slice %10 {offsets = [0, 64], sizes = [8, 32], strides = [1, 1]} : vector<8x512xf32> to vector<8x32xf32>
    %cst_25 = arith.constant dense<0.000000e+00> : vector<8x8xf32>
    %34 = tpu.matmul %33, %3, %cst_25 {dimension_numbers = #tpu.dot_dimension_numbers<[1], [0], [0], [1], [0, 0, 1, 1], [], []>} : vector<8x32xf32>, vector<32x8xf32>, vector<8x8xf32> -> vector<8x8xf32>
    %35 = vector.extract_strided_slice %7 {offsets = [0, 2], sizes = [8, 1], strides = [1, 1]} : vector<8x16xf32> to vector<8x1xf32>
    %36 = vector.broadcast %35 : vector<8x1xf32> to vector<8x8xf32>
    %37 = arith.addf %34, %36 : vector<8x8xf32>
    %38 = vector.extract_strided_slice %9 {offsets = [2, 0], sizes = [1, 8], strides = [1, 1]} : vector<16x8xf32> to vector<1x8xf32>
    %39 = vector.broadcast %38 : vector<1x8xf32> to vector<8x8xf32>
    %40 = arith.addf %37, %39 : vector<8x8xf32>
    %c0_26 = arith.constant 0 : index
    %c2 = arith.constant 2 : index
    %c0_27 = arith.constant 0 : index
    %c0_28 = arith.constant 0 : index
    %41 = vector.load %arg8[%c0_26, %c2, %c0_27, %c0_28] : memref<1x16x8x8xf32, #tpu.memory_space<vmem>>, vector<1x1x8x8xf32>
    %42 = vector.shape_cast %41 : vector<1x1x8x8xf32> to vector<8x8xf32>
    %43 = vector.shape_cast %40 : vector<8x8xf32> to vector<1x1x8x8xf32>
    tpu.vector_store %arg8[%c0_26, %c2, %c0_27, %c0_28], %43 {strides = array<i32>} : memref<1x16x8x8xf32, #tpu.memory_space<vmem>>, vector<1x1x8x8xf32>,
    %44 = vector.extract_strided_slice %10 {offsets = [0, 96], sizes = [8, 32], strides = [1, 1]} : vector<8x512xf32> to vector<8x32xf32>
    %cst_29 = arith.constant dense<0.000000e+00> : vector<8x8xf32>
    %45 = tpu.matmul %44, %3, %cst_29 {dimension_numbers = #tpu.dot_dimension_numbers<[1], [0], [0], [1], [0, 0, 1, 1], [], []>} : vector<8x32xf32>, vector<32x8xf32>, vector<8x8xf32> -> vector<8x8xf32>
    %46 = vector.extract_strided_slice %7 {offsets = [0, 3], sizes = [8, 1], strides = [1, 1]} : vector<8x16xf32> to vector<8x1xf32>
    %47 = vector.broadcast %46 : vector<8x1xf32> to vector<8x8xf32>
    %48 = arith.addf %45, %47 : vector<8x8xf32>
    %49 = vector.extract_strided_slice %9 {offsets = [3, 0], sizes = [1, 8], strides = [1, 1]} : vector<16x8xf32> to vector<1x8xf32>
    %50 = vector.broadcast %49 : vector<1x8xf32> to vector<8x8xf32>
    %51 = arith.addf %48, %50 : vector<8x8xf32>
    %c0_30 = arith.constant 0 : index
    %c3 = arith.constant 3 : index
    %c0_31 = arith.constant 0 : index
    %c0_32 = arith.constant 0 : index
    %52 = vector.load %arg8[%c0_30, %c3, %c0_31, %c0_32] : memref<1x16x8x8xf32, #tpu.memory_space<vmem>>, vector<1x1x8x8xf32>
    %53 = vector.shape_cast %52 : vector<1x1x8x8xf32> to vector<8x8xf32>
    %54 = vector.shape_cast %51 : vector<8x8xf32> to vector<1x1x8x8xf32>
    tpu.vector_store %arg8[%c0_30, %c3, %c0_31, %c0_32], %54 {strides = array<i32>} : memref<1x16x8x8xf32, #tpu.memory_space<vmem>>, vector<1x1x8x8xf32>,
    %55 = vector.extract_strided_slice %10 {offsets = [0, 128], sizes = [8, 32], strides = [1, 1]} : vector<8x512xf32> to vector<8x32xf32>
    %cst_33 = arith.constant dense<0.000000e+00> : vector<8x8xf32>
    %56 = tpu.matmul %55, %3, %cst_33 {dimension_numbers = #tpu.dot_dimension_numbers<[1], [0], [0], [1], [0, 0, 1, 1], [], []>} : vector<8x32xf32>, vector<32x8xf32>, vector<8x8xf32> -> vector<8x8xf32>
    %57 = vector.extract_strided_slice %7 {offsets = [0, 4], sizes = [8, 1], strides = [1, 1]} : vector<8x16xf32> to vector<8x1xf32>
    %58 = vector.broadcast %57 : vector<8x1xf32> to vector<8x8xf32>
    %59 = arith.addf %56, %58 : vector<8x8xf32>
    %60 = vector.extract_strided_slice %9 {offsets = [4, 0], sizes = [1, 8], strides = [1, 1]} : vector<16x8xf32> to vector<1x8xf32>
    %61 = vector.broadcast %60 : vector<1x8xf32> to vector<8x8xf32>
    %62 = arith.addf %59, %61 : vector<8x8xf32>
    %c0_34 = arith.constant 0 : index
    %c4 = arith.constant 4 : index
    %c0_35 = arith.constant 0 : index
    %c0_36 = arith.constant 0 : index
    %63 = vector.load %arg8[%c0_34, %c4, %c0_35, %c0_36] : memref<1x16x8x8xf32, #tpu.memory_space<vmem>>, vector<1x1x8x8xf32>
    %64 = vector.shape_cast %63 : vector<1x1x8x8xf32> to vector<8x8xf32>
    %65 = vector.shape_cast %62 : vector<8x8xf32> to vector<1x1x8x8xf32>
    tpu.vector_store %arg8[%c0_34, %c4, %c0_35, %c0_36], %65 {strides = array<i32>} : memref<1x16x8x8xf32, #tpu.memory_space<vmem>>, vector<1x1x8x8xf32>,
    %66 = vector.extract_strided_slice %10 {offsets = [0, 160], sizes = [8, 32], strides = [1, 1]} : vector<8x512xf32> to vector<8x32xf32>
    %cst_37 = arith.constant dense<0.000000e+00> : vector<8x8xf32>
    %67 = tpu.matmul %66, %3, %cst_37 {dimension_numbers = #tpu.dot_dimension_numbers<[1], [0], [0], [1], [0, 0, 1, 1], [], []>} : vector<8x32xf32>, vector<32x8xf32>, vector<8x8xf32> -> vector<8x8xf32>
    %68 = vector.extract_strided_slice %7 {offsets = [0, 5], sizes = [8, 1], strides = [1, 1]} : vector<8x16xf32> to vector<8x1xf32>
    %69 = vector.broadcast %68 : vector<8x1xf32> to vector<8x8xf32>
    %70 = arith.addf %67, %69 : vector<8x8xf32>
    %71 = vector.extract_strided_slice %9 {offsets = [5, 0], sizes = [1, 8], strides = [1, 1]} : vector<16x8xf32> to vector<1x8xf32>
    %72 = vector.broadcast %71 : vector<1x8xf32> to vector<8x8xf32>
    %73 = arith.addf %70, %72 : vector<8x8xf32>
    %c0_38 = arith.constant 0 : index
    %c5 = arith.constant 5 : index
    %c0_39 = arith.constant 0 : index
    %c0_40 = arith.constant 0 : index
    %74 = vector.load %arg8[%c0_38, %c5, %c0_39, %c0_40] : memref<1x16x8x8xf32, #tpu.memory_space<vmem>>, vector<1x1x8x8xf32>
    %75 = vector.shape_cast %74 : vector<1x1x8x8xf32> to vector<8x8xf32>
    %76 = vector.shape_cast %73 : vector<8x8xf32> to vector<1x1x8x8xf32>
    tpu.vector_store %arg8[%c0_38, %c5, %c0_39, %c0_40], %76 {strides = array<i32>} : memref<1x16x8x8xf32, #tpu.memory_space<vmem>>, vector<1x1x8x8xf32>,
    %77 = vector.extract_strided_slice %10 {offsets = [0, 192], sizes = [8, 32], strides = [1, 1]} : vector<8x512xf32> to vector<8x32xf32>
    %cst_41 = arith.constant dense<0.000000e+00> : vector<8x8xf32>
    %78 = tpu.matmul %77, %3, %cst_41 {dimension_numbers = #tpu.dot_dimension_numbers<[1], [0], [0], [1], [0, 0, 1, 1], [], []>} : vector<8x32xf32>, vector<32x8xf32>, vector<8x8xf32> -> vector<8x8xf32>
    %79 = vector.extract_strided_slice %7 {offsets = [0, 6], sizes = [8, 1], strides = [1, 1]} : vector<8x16xf32> to vector<8x1xf32>
    %80 = vector.broadcast %79 : vector<8x1xf32> to vector<8x8xf32>
    %81 = arith.addf %78, %80 : vector<8x8xf32>
    %82 = vector.extract_strided_slice %9 {offsets = [6, 0], sizes = [1, 8], strides = [1, 1]} : vector<16x8xf32> to vector<1x8xf32>
    %83 = vector.broadcast %82 : vector<1x8xf32> to vector<8x8xf32>
    %84 = arith.addf %81, %83 : vector<8x8xf32>
    %c0_42 = arith.constant 0 : index
    %c6 = arith.constant 6 : index
    %c0_43 = arith.constant 0 : index
    %c0_44 = arith.constant 0 : index
    %85 = vector.load %arg8[%c0_42, %c6, %c0_43, %c0_44] : memref<1x16x8x8xf32, #tpu.memory_space<vmem>>, vector<1x1x8x8xf32>
    %86 = vector.shape_cast %85 : vector<1x1x8x8xf32> to vector<8x8xf32>
    %87 = vector.shape_cast %84 : vector<8x8xf32> to vector<1x1x8x8xf32>
    tpu.vector_store %arg8[%c0_42, %c6, %c0_43, %c0_44], %87 {strides = array<i32>} : memref<1x16x8x8xf32, #tpu.memory_space<vmem>>, vector<1x1x8x8xf32>,
    %88 = vector.extract_strided_slice %10 {offsets = [0, 224], sizes = [8, 32], strides = [1, 1]} : vector<8x512xf32> to vector<8x32xf32>
    %cst_45 = arith.constant dense<0.000000e+00> : vector<8x8xf32>
    %89 = tpu.matmul %88, %3, %cst_45 {dimension_numbers = #tpu.dot_dimension_numbers<[1], [0], [0], [1], [0, 0, 1, 1], [], []>} : vector<8x32xf32>, vector<32x8xf32>, vector<8x8xf32> -> vector<8x8xf32>
    %90 = vector.extract_strided_slice %7 {offsets = [0, 7], sizes = [8, 1], strides = [1, 1]} : vector<8x16xf32> to vector<8x1xf32>
    %91 = vector.broadcast %90 : vector<8x1xf32> to vector<8x8xf32>
    %92 = arith.addf %89, %91 : vector<8x8xf32>
    %93 = vector.extract_strided_slice %9 {offsets = [7, 0], sizes = [1, 8], strides = [1, 1]} : vector<16x8xf32> to vector<1x8xf32>
    %94 = vector.broadcast %93 : vector<1x8xf32> to vector<8x8xf32>
    %95 = arith.addf %92, %94 : vector<8x8xf32>
    %c0_46 = arith.constant 0 : index
    %c7 = arith.constant 7 : index
    %c0_47 = arith.constant 0 : index
    %c0_48 = arith.constant 0 : index
    %96 = vector.load %arg8[%c0_46, %c7, %c0_47, %c0_48] : memref<1x16x8x8xf32, #tpu.memory_space<vmem>>, vector<1x1x8x8xf32>
    %97 = vector.shape_cast %96 : vector<1x1x8x8xf32> to vector<8x8xf32>
    %98 = vector.shape_cast %95 : vector<8x8xf32> to vector<1x1x8x8xf32>
    tpu.vector_store %arg8[%c0_46, %c7, %c0_47, %c0_48], %98 {strides = array<i32>} : memref<1x16x8x8xf32, #tpu.memory_space<vmem>>, vector<1x1x8x8xf32>,
    %99 = vector.extract_strided_slice %10 {offsets = [0, 256], sizes = [8, 32], strides = [1, 1]} : vector<8x512xf32> to vector<8x32xf32>
    %cst_49 = arith.constant dense<0.000000e+00> : vector<8x8xf32>
    %100 = tpu.matmul %99, %3, %cst_49 {dimension_numbers = #tpu.dot_dimension_numbers<[1], [0], [0], [1], [0, 0, 1, 1], [], []>} : vector<8x32xf32>, vector<32x8xf32>, vector<8x8xf32> -> vector<8x8xf32>
    %101 = vector.extract_strided_slice %7 {offsets = [0, 8], sizes = [8, 1], strides = [1, 1]} : vector<8x16xf32> to vector<8x1xf32>
    %102 = vector.broadcast %101 : vector<8x1xf32> to vector<8x8xf32>
    %103 = arith.addf %100, %102 : vector<8x8xf32>
    %104 = vector.extract_strided_slice %9 {offsets = [8, 0], sizes = [1, 8], strides = [1, 1]} : vector<16x8xf32> to vector<1x8xf32>
    %105 = vector.broadcast %104 : vector<1x8xf32> to vector<8x8xf32>
    %106 = arith.addf %103, %105 : vector<8x8xf32>
    %c0_50 = arith.constant 0 : index
    %c8 = arith.constant 8 : index
    %c0_51 = arith.constant 0 : index
    %c0_52 = arith.constant 0 : index
    %107 = vector.load %arg8[%c0_50, %c8, %c0_51, %c0_52] : memref<1x16x8x8xf32, #tpu.memory_space<vmem>>, vector<1x1x8x8xf32>
    %108 = vector.shape_cast %107 : vector<1x1x8x8xf32> to vector<8x8xf32>
    %109 = vector.shape_cast %106 : vector<8x8xf32> to vector<1x1x8x8xf32>
    tpu.vector_store %arg8[%c0_50, %c8, %c0_51, %c0_52], %109 {strides = array<i32>} : memref<1x16x8x8xf32, #tpu.memory_space<vmem>>, vector<1x1x8x8xf32>,
    %110 = vector.extract_strided_slice %10 {offsets = [0, 288], sizes = [8, 32], strides = [1, 1]} : vector<8x512xf32> to vector<8x32xf32>
    %cst_53 = arith.constant dense<0.000000e+00> : vector<8x8xf32>
    %111 = tpu.matmul %110, %3, %cst_53 {dimension_numbers = #tpu.dot_dimension_numbers<[1], [0], [0], [1], [0, 0, 1, 1], [], []>} : vector<8x32xf32>, vector<32x8xf32>, vector<8x8xf32> -> vector<8x8xf32>
    %112 = vector.extract_strided_slice %7 {offsets = [0, 9], sizes = [8, 1], strides = [1, 1]} : vector<8x16xf32> to vector<8x1xf32>
    %113 = vector.broadcast %112 : vector<8x1xf32> to vector<8x8xf32>
    %114 = arith.addf %111, %113 : vector<8x8xf32>
    %115 = vector.extract_strided_slice %9 {offsets = [9, 0], sizes = [1, 8], strides = [1, 1]} : vector<16x8xf32> to vector<1x8xf32>
    %116 = vector.broadcast %115 : vector<1x8xf32> to vector<8x8xf32>
    %117 = arith.addf %114, %116 : vector<8x8xf32>
    %c0_54 = arith.constant 0 : index
    %c9 = arith.constant 9 : index
    %c0_55 = arith.constant 0 : index
    %c0_56 = arith.constant 0 : index
    %118 = vector.load %arg8[%c0_54, %c9, %c0_55, %c0_56] : memref<1x16x8x8xf32, #tpu.memory_space<vmem>>, vector<1x1x8x8xf32>
    %119 = vector.shape_cast %118 : vector<1x1x8x8xf32> to vector<8x8xf32>
    %120 = vector.shape_cast %117 : vector<8x8xf32> to vector<1x1x8x8xf32>
    tpu.vector_store %arg8[%c0_54, %c9, %c0_55, %c0_56], %120 {strides = array<i32>} : memref<1x16x8x8xf32, #tpu.memory_space<vmem>>, vector<1x1x8x8xf32>,
    %121 = vector.extract_strided_slice %10 {offsets = [0, 320], sizes = [8, 32], strides = [1, 1]} : vector<8x512xf32> to vector<8x32xf32>
    %cst_57 = arith.constant dense<0.000000e+00> : vector<8x8xf32>
    %122 = tpu.matmul %121, %3, %cst_57 {dimension_numbers = #tpu.dot_dimension_numbers<[1], [0], [0], [1], [0, 0, 1, 1], [], []>} : vector<8x32xf32>, vector<32x8xf32>, vector<8x8xf32> -> vector<8x8xf32>
    %123 = vector.extract_strided_slice %7 {offsets = [0, 10], sizes = [8, 1], strides = [1, 1]} : vector<8x16xf32> to vector<8x1xf32>
    %124 = vector.broadcast %123 : vector<8x1xf32> to vector<8x8xf32>
    %125 = arith.addf %122, %124 : vector<8x8xf32>
    %126 = vector.extract_strided_slice %9 {offsets = [10, 0], sizes = [1, 8], strides = [1, 1]} : vector<16x8xf32> to vector<1x8xf32>
    %127 = vector.broadcast %126 : vector<1x8xf32> to vector<8x8xf32>
    %128 = arith.addf %125, %127 : vector<8x8xf32>
    %c0_58 = arith.constant 0 : index
    %c10 = arith.constant 10 : index
    %c0_59 = arith.constant 0 : index
    %c0_60 = arith.constant 0 : index
    %129 = vector.load %arg8[%c0_58, %c10, %c0_59, %c0_60] : memref<1x16x8x8xf32, #tpu.memory_space<vmem>>, vector<1x1x8x8xf32>
    %130 = vector.shape_cast %129 : vector<1x1x8x8xf32> to vector<8x8xf32>
    %131 = vector.shape_cast %128 : vector<8x8xf32> to vector<1x1x8x8xf32>
    tpu.vector_store %arg8[%c0_58, %c10, %c0_59, %c0_60], %131 {strides = array<i32>} : memref<1x16x8x8xf32, #tpu.memory_space<vmem>>, vector<1x1x8x8xf32>,
    %132 = vector.extract_strided_slice %10 {offsets = [0, 352], sizes = [8, 32], strides = [1, 1]} : vector<8x512xf32> to vector<8x32xf32>
    %cst_61 = arith.constant dense<0.000000e+00> : vector<8x8xf32>
    %133 = tpu.matmul %132, %3, %cst_61 {dimension_numbers = #tpu.dot_dimension_numbers<[1], [0], [0], [1], [0, 0, 1, 1], [], []>} : vector<8x32xf32>, vector<32x8xf32>, vector<8x8xf32> -> vector<8x8xf32>
    %134 = vector.extract_strided_slice %7 {offsets = [0, 11], sizes = [8, 1], strides = [1, 1]} : vector<8x16xf32> to vector<8x1xf32>
    %135 = vector.broadcast %134 : vector<8x1xf32> to vector<8x8xf32>
    %136 = arith.addf %133, %135 : vector<8x8xf32>
    %137 = vector.extract_strided_slice %9 {offsets = [11, 0], sizes = [1, 8], strides = [1, 1]} : vector<16x8xf32> to vector<1x8xf32>
    %138 = vector.broadcast %137 : vector<1x8xf32> to vector<8x8xf32>
    %139 = arith.addf %136, %138 : vector<8x8xf32>
    %c0_62 = arith.constant 0 : index
    %c11 = arith.constant 11 : index
    %c0_63 = arith.constant 0 : index
    %c0_64 = arith.constant 0 : index
    %140 = vector.load %arg8[%c0_62, %c11, %c0_63, %c0_64] : memref<1x16x8x8xf32, #tpu.memory_space<vmem>>, vector<1x1x8x8xf32>
    %141 = vector.shape_cast %140 : vector<1x1x8x8xf32> to vector<8x8xf32>
    %142 = vector.shape_cast %139 : vector<8x8xf32> to vector<1x1x8x8xf32>
    tpu.vector_store %arg8[%c0_62, %c11, %c0_63, %c0_64], %142 {strides = array<i32>} : memref<1x16x8x8xf32, #tpu.memory_space<vmem>>, vector<1x1x8x8xf32>,
    %143 = vector.extract_strided_slice %10 {offsets = [0, 384], sizes = [8, 32], strides = [1, 1]} : vector<8x512xf32> to vector<8x32xf32>
    %cst_65 = arith.constant dense<0.000000e+00> : vector<8x8xf32>
    %144 = tpu.matmul %143, %3, %cst_65 {dimension_numbers = #tpu.dot_dimension_numbers<[1], [0], [0], [1], [0, 0, 1, 1], [], []>} : vector<8x32xf32>, vector<32x8xf32>, vector<8x8xf32> -> vector<8x8xf32>
    %145 = vector.extract_strided_slice %7 {offsets = [0, 12], sizes = [8, 1], strides = [1, 1]} : vector<8x16xf32> to vector<8x1xf32>
    %146 = vector.broadcast %145 : vector<8x1xf32> to vector<8x8xf32>
    %147 = arith.addf %144, %146 : vector<8x8xf32>
    %148 = vector.extract_strided_slice %9 {offsets = [12, 0], sizes = [1, 8], strides = [1, 1]} : vector<16x8xf32> to vector<1x8xf32>
    %149 = vector.broadcast %148 : vector<1x8xf32> to vector<8x8xf32>
    %150 = arith.addf %147, %149 : vector<8x8xf32>
    %c0_66 = arith.constant 0 : index
    %c12 = arith.constant 12 : index
    %c0_67 = arith.constant 0 : index
    %c0_68 = arith.constant 0 : index
    %151 = vector.load %arg8[%c0_66, %c12, %c0_67, %c0_68] : memref<1x16x8x8xf32, #tpu.memory_space<vmem>>, vector<1x1x8x8xf32>
    %152 = vector.shape_cast %151 : vector<1x1x8x8xf32> to vector<8x8xf32>
    %153 = vector.shape_cast %150 : vector<8x8xf32> to vector<1x1x8x8xf32>
    tpu.vector_store %arg8[%c0_66, %c12, %c0_67, %c0_68], %153 {strides = array<i32>} : memref<1x16x8x8xf32, #tpu.memory_space<vmem>>, vector<1x1x8x8xf32>,
    %154 = vector.extract_strided_slice %10 {offsets = [0, 416], sizes = [8, 32], strides = [1, 1]} : vector<8x512xf32> to vector<8x32xf32>
    %cst_69 = arith.constant dense<0.000000e+00> : vector<8x8xf32>
    %155 = tpu.matmul %154, %3, %cst_69 {dimension_numbers = #tpu.dot_dimension_numbers<[1], [0], [0], [1], [0, 0, 1, 1], [], []>} : vector<8x32xf32>, vector<32x8xf32>, vector<8x8xf32> -> vector<8x8xf32>
    %156 = vector.extract_strided_slice %7 {offsets = [0, 13], sizes = [8, 1], strides = [1, 1]} : vector<8x16xf32> to vector<8x1xf32>
    %157 = vector.broadcast %156 : vector<8x1xf32> to vector<8x8xf32>
    %158 = arith.addf %155, %157 : vector<8x8xf32>
    %159 = vector.extract_strided_slice %9 {offsets = [13, 0], sizes = [1, 8], strides = [1, 1]} : vector<16x8xf32> to vector<1x8xf32>
    %160 = vector.broadcast %159 : vector<1x8xf32> to vector<8x8xf32>
    %161 = arith.addf %158, %160 : vector<8x8xf32>
    %c0_70 = arith.constant 0 : index
    %c13 = arith.constant 13 : index
    %c0_71 = arith.constant 0 : index
    %c0_72 = arith.constant 0 : index
    %162 = vector.load %arg8[%c0_70, %c13, %c0_71, %c0_72] : memref<1x16x8x8xf32, #tpu.memory_space<vmem>>, vector<1x1x8x8xf32>
    %163 = vector.shape_cast %162 : vector<1x1x8x8xf32> to vector<8x8xf32>
    %164 = vector.shape_cast %161 : vector<8x8xf32> to vector<1x1x8x8xf32>
    tpu.vector_store %arg8[%c0_70, %c13, %c0_71, %c0_72], %164 {strides = array<i32>} : memref<1x16x8x8xf32, #tpu.memory_space<vmem>>, vector<1x1x8x8xf32>,
    %165 = vector.extract_strided_slice %10 {offsets = [0, 448], sizes = [8, 32], strides = [1, 1]} : vector<8x512xf32> to vector<8x32xf32>
    %cst_73 = arith.constant dense<0.000000e+00> : vector<8x8xf32>
    %166 = tpu.matmul %165, %3, %cst_73 {dimension_numbers = #tpu.dot_dimension_numbers<[1], [0], [0], [1], [0, 0, 1, 1], [], []>} : vector<8x32xf32>, vector<32x8xf32>, vector<8x8xf32> -> vector<8x8xf32>
    %167 = vector.extract_strided_slice %7 {offsets = [0, 14], sizes = [8, 1], strides = [1, 1]} : vector<8x16xf32> to vector<8x1xf32>
    %168 = vector.broadcast %167 : vector<8x1xf32> to vector<8x8xf32>
    %169 = arith.addf %166, %168 : vector<8x8xf32>
    %170 = vector.extract_strided_slice %9 {offsets = [14, 0], sizes = [1, 8], strides = [1, 1]} : vector<16x8xf32> to vector<1x8xf32>
    %171 = vector.broadcast %170 : vector<1x8xf32> to vector<8x8xf32>
    %172 = arith.addf %169, %171 : vector<8x8xf32>
    %c0_74 = arith.constant 0 : index
    %c14 = arith.constant 14 : index
    %c0_75 = arith.constant 0 : index
    %c0_76 = arith.constant 0 : index
    %173 = vector.load %arg8[%c0_74, %c14, %c0_75, %c0_76] : memref<1x16x8x8xf32, #tpu.memory_space<vmem>>, vector<1x1x8x8xf32>
    %174 = vector.shape_cast %173 : vector<1x1x8x8xf32> to vector<8x8xf32>
    %175 = vector.shape_cast %172 : vector<8x8xf32> to vector<1x1x8x8xf32>
    tpu.vector_store %arg8[%c0_74, %c14, %c0_75, %c0_76], %175 {strides = array<i32>} : memref<1x16x8x8xf32, #tpu.memory_space<vmem>>, vector<1x1x8x8xf32>,
    %176 = vector.extract_strided_slice %10 {offsets = [0, 480], sizes = [8, 32], strides = [1, 1]} : vector<8x512xf32> to vector<8x32xf32>
    %cst_77 = arith.constant dense<0.000000e+00> : vector<8x8xf32>
    %177 = tpu.matmul %176, %3, %cst_77 {dimension_numbers = #tpu.dot_dimension_numbers<[1], [0], [0], [1], [0, 0, 1, 1], [], []>} : vector<8x32xf32>, vector<32x8xf32>, vector<8x8xf32> -> vector<8x8xf32>
    %178 = vector.extract_strided_slice %7 {offsets = [0, 15], sizes = [8, 1], strides = [1, 1]} : vector<8x16xf32> to vector<8x1xf32>
    %179 = vector.broadcast %178 : vector<8x1xf32> to vector<8x8xf32>
    %180 = arith.addf %177, %179 : vector<8x8xf32>
    %181 = vector.extract_strided_slice %9 {offsets = [15, 0], sizes = [1, 8], strides = [1, 1]} : vector<16x8xf32> to vector<1x8xf32>
    %182 = vector.broadcast %181 : vector<1x8xf32> to vector<8x8xf32>
    %183 = arith.addf %180, %182 : vector<8x8xf32>
    %c0_78 = arith.constant 0 : index
    %c15 = arith.constant 15 : index
    %c0_79 = arith.constant 0 : index
    %c0_80 = arith.constant 0 : index
    %184 = vector.load %arg8[%c0_78, %c15, %c0_79, %c0_80] : memref<1x16x8x8xf32, #tpu.memory_space<vmem>>, vector<1x1x8x8xf32>
    %185 = vector.shape_cast %184 : vector<1x1x8x8xf32> to vector<8x8xf32>
    %186 = vector.shape_cast %183 : vector<8x8xf32> to vector<1x1x8x8xf32>
    tpu.vector_store %arg8[%c0_78, %c15, %c0_79, %c0_80], %186 {strides = array<i32>} : memref<1x16x8x8xf32, #tpu.memory_space<vmem>>, vector<1x1x8x8xf32>,
    return
  }
  func.func @transform_0(%arg0: i32, %arg1: i32, %arg2: i32) -> (i32, i32, i32) {
    %c0_i32 = arith.constant 0 : i32
    %c0_i32_0 = arith.constant 0 : i32
    return %arg1, %arg2, %c0_i32 : i32, i32, i32
  }
  func.func @transform_1(%arg0: i32, %arg1: i32, %arg2: i32) -> (i32, i32, i32) {
    %c0_i32 = arith.constant 0 : i32
    %c0_i32_0 = arith.constant 0 : i32
    %c0_i32_1 = arith.constant 0 : i32
    return %arg1, %c0_i32, %c0_i32_0 : i32, i32, i32
  }
  func.func @transform_2(%arg0: i32, %arg1: i32, %arg2: i32) -> (i32, i32, i32) {
    %c0_i32 = arith.constant 0 : i32
    %c0_i32_0 = arith.constant 0 : i32
    %c0_i32_1 = arith.constant 0 : i32
    return %arg0, %c0_i32, %c0_i32_0 : i32, i32, i32
  }
  func.func @transform_3(%arg0: i32, %arg1: i32, %arg2: i32) -> (i32, i32, i32, i32) {
    %c0_i32 = arith.constant 0 : i32
    %c0_i32_0 = arith.constant 0 : i32
    return %arg1, %arg0, %arg2, %c0_i32 : i32, i32, i32, i32
  }
  func.func @transform_4(%arg0: i32, %arg1: i32, %arg2: i32) -> (i32, i32, i32, i32) {
    %c0_i32 = arith.constant 0 : i32
    %c0_i32_0 = arith.constant 0 : i32
    %c0_i32_1 = arith.constant 0 : i32
    return %arg1, %arg0, %c0_i32, %c0_i32_0 : i32, i32, i32, i32
  }
  func.func @transform_5(%arg0: i32, %arg1: i32, %arg2: i32) -> (i32, i32, i32, i32) {
    %c0_i32 = arith.constant 0 : i32
    %c0_i32_0 = arith.constant 0 : i32
    return %arg1, %arg0, %arg2, %c0_i32 : i32, i32, i32, i32
  }
}

</mosaic_0001>

<bundles_post_ra>
// kernel: tpu_custom_call.1
= control target key start
LH: loop header
LB: loop body
LE: loop exit
PB: predicated region body
PF: predicated region fallthrough
CT: control target
= control target key end

     0   :  { %10 = vsyncpa [#allocation3], 0  ;;  %s3159_s0 = inlined_call_operand.hbm [shape: f32[2,8,32], index: 0, kind: input, shape index: {}]   ;;  %s3160_s1 = inlined_call_operand.vmem [shape: f32[2,32,8], index: 1, kind: input, shape index: {}]   ;;  %s3161_s2 = inlined_call_operand.vmem [shape: f32[1,32,512], index: 2, kind: input, shape index: {}]   ;;  %s3162_s3 = inlined_call_operand.hbm [shape: f32[2,1,8,16], index: 3, kind: input, shape index: {}]   ;;  %s3163_s4 = inlined_call_operand.vmem [shape: f32[2,1,16,8], index: 4, kind: input, shape index: {}]   ;;  %s3164_s5 = inlined_call_operand.vmem [shape: f32[2,16,8,8], index: 5, kind: output, shape index: {}]  }
   0x1   :  { %12 = vsyncpa [#allocation3 + $0x1], 0 }
   0x2   :  { %13 = vsyncpa [#allocation5], 0 }
   0x3   :  { %15 = vsyncpa [#allocation5 + $0x1], 0  ;;  %s2680_s18 = smov 0   ;;  %s2682_s19 = smov 0  }
   0x4   :  { %s2684_s20 = smov 0   ;;  %s2686_s21 = smov 0  }
   0x5   :  { %s2688_s22 = smov 0   ;;  %s2690_s23 = smov 0  }
   0x6 LB: > { %s2106_s24 = sadd.s32 4294967295, %s2625_s23   ;;  %s36_s25 = sadd.s32 1, %s2621_s22  ;;  %s2625_s23 = sphi %s2690_s23, %s21_s23   ;;  %s2621_s22 = sphi %s2688_s22, %s3173_s22   ;;  %s2617_s21 = sphi %s2686_s21, %s3172_s21   ;;  %s2613_s20 = sphi %s2684_s20, %s3171_s20   ;;  %s2609_s19 = sphi %s2682_s19, %s3170_s19   ;;  %s2605_s18 = sphi %s2680_s18, %s3169_s18  }
   0x7   : > { %p38_p0 = scmp.ge.s32.totalorder %s36_s25, 2  ;;  %s49_s26 = sadd.s32 1, %s2613_s20 }
   0x8   : > { %p56_p1 = scmp.ne.s32.totalorder %s2613_s20, %s2609_s19  ;;  %p57_p2 = scmp.eq.s32.totalorder %s2625_s23, 0 }
   0x9   : > { %s3175_s25 = smov (%p38_p0, %s36_s25), 0  ;;  %p62_p4 = scmp.ne.s32.totalorder %s2609_s19, %s2605_s18 }
   0xa   : > { %p2716_p3 = por %p57_p2, %p56_p1  ;;  %s44_s28 = ssub.s32 %s2621_s22, %s3175_s25 }
   0xb   : > { %p63_p5 = scmp.eq.s32.totalorder %s2106_s24, 0  ;;  %p47_p6 = scmp.eq.s32.totalorder %s44_s28, 0 }
   0xc   : > { %p2429_p8 = scmp.lt.s32.totalorder %s2625_s23, 2  ;;  %s2732_s6 = sand.u32 1, %s2613_s20  }
   0xd   : > { %p2723_p7 = por %p63_p5, %p62_p4  ;;  %s2112_s7 = sshll.u32 %s2621_s22, 7 }
   0xe   : > { %s2729_s30 = scalar_select %p47_p6, %s2613_s20, %s49_s26  }
   0xf   : > { %s2111_s8 = sshll.u32 %s2732_s6, 3  ;;  %s244_s11 = scalar_lea.hbm %s3159_s0, %s2112_s7 }
  0x10   : > { %s238_s12 = scalar_lea.vmem [#allocation2], %s2111_s8  ;;  %p2741_p9 = pnand %p2429_p8, %p2716_p3 }
  0x11   : > { %s246_s13 = sshll.u32 %s238_s12, 4  ;;  %p2115_p10 = scmp.ge.s32.totalorder %s2625_s23, 1  ;;  %s247_s13 = int_to_ptr.vmem [resolvable:$true] %s246_s13 }
  0x12   : > { %p291_p11 = scmp.lt.s32.totalorder %s2625_s23, 3  ;;  %s235_s15 = scalar_lea.sflag [#allocation3], %s2732_s6 }
  0x13   : > { %p2517_p12 = pneg %p2741_p9  ;;  %s2528_s16 = scalar_lea.vmem %s247_s13, 128 }
  0x14   : > { %p2529_p13 = scmp.ne.s32.totalorder %s247_s13, %s2528_s16  ;;  %s2627_s17 = smov [#allocation2]  }
  0x15   : > { %s2533_s18 = sshll.u32 %s2627_s17, 4  ;;  %s2534_s18 = int_to_ptr.vmem [resolvable:$false] %s2533_s18 }
  0x16   : > { %p2531_p0 = pnand %p2529_p13, %p2517_p12  ;;  %s2535_s24 = scalar_lea.vmem %s2534_s18, 256 }
  0x17   : > { %p2536_p2 = scmp.lt.s32.totalorder %s247_s13, %s2534_s18  ;;  %p2537_p3 = scmp.lt.s32.totalorder %s2535_s24, %s2528_s16 }
  0x18   : > { %p2532_p1 = pneg %p2531_p0 }
  0x19   : > { %p2538_p4 = por %p2537_p3, %p2536_p2 }
  0x1b   : > { %p2539_p5 = pnand %p2538_p4, %p2532_p1 }
  0x1d   : > { %2542 = shalt.err (!%p2539_p5)
}
  0x1e   : > { %2425 = dma.hbm_to_vmem [thread:$0]  (!%p2741_p9), %s244_s11, 128, %s247_s13, %s235_s15  }
  0x1f   : > { %p2759_p6 = pnand %p2115_p10, %p291_p11  ;;  %s272_s9 = scalar_lea.hbm %s3162_s3, %s2112_s7 }
  0x20   : > { %s265_s10 = scalar_lea.vmem [#allocation4], %s2111_s8  ;;  %s262_s16 = scalar_lea.sflag [#allocation5], %s2732_s6 }
  0x21   : > { %s274_s12 = sshll.u32 %s265_s10, 4  ;;  %s2628_s11 = smov [#allocation4]   ;;  %s275_s12 = int_to_ptr.vmem [resolvable:$true] %s274_s12 }
  0x22   : > { %s2556_s17 = scalar_lea.vmem %s275_s12, 128  ;;  %s2561_s13 = sshll.u32 %s2628_s11, 4  ;;  %s2562_s13 = int_to_ptr.vmem [resolvable:$false] %s2561_s13 }
  0x23   : > { %p2557_p8 = scmp.ne.s32.totalorder %s275_s12, %s2556_s17  ;;  %s2563_s15 = scalar_lea.vmem %s2562_s13, 256 }
  0x24   : > { %p2564_p10 = scmp.lt.s32.totalorder %s275_s12, %s2562_s13  ;;  %p2565_p11 = scmp.lt.s32.totalorder %s2563_s15, %s2556_s17 }
  0x25   : > { %p2559_p13 = pnand %p2557_p8, %p2517_p12 }
  0x26   : > { %p2566_p1 = por %p2565_p11, %p2564_p10 }
  0x27   : > { %p2560_p0 = pneg %p2559_p13 }
  0x29   : > { %p2567_p2 = pnand %p2566_p1, %p2560_p0 }
  0x2b   : > { %2570 = shalt.err (!%p2567_p2)
}
  0x2c   : > { %2428 = dma.hbm_to_vmem [thread:$0]  (!%p2741_p9), %s272_s9, 128, %s275_s12, %s262_s16  }
  0x2d   : > { %295 = sbr.rel (%p2759_p6) target bundleno = 636 (0x27c), region = 40  ;;  %s297_s6 = sand.u32 (!%p2759_p6), 1, %s2609_s19  }
  0x2e   : > { %s2116_s7 = sshll.u32 (!%p2759_p6), %s297_s6, 3  ;;  %s298_s8 = scalar_lea.sflag (!%p2759_p6), [#allocation3], %s297_s6 }
  0x2f   : > { %s2775_s18 = scalar_lea.vmem (!%p2759_p6), [#allocation2], %s2116_s7 }
  0x32   : > { %2596 = dma.done.wait (%p2723_p7), %s298_s8, 128  }
  0x33   : > { %2598 = vsyncadd (%p2723_p7), %s298_s8, 4294967168  ;;  %s307_s24 = scalar_lea.sflag [#allocation5], %s297_s6  ;;  %s2781_s27 = scalar_lea.vmem [#allocation4], %s2116_s7 }
  0x34   : > { %2600 = dma.done.wait (%p2723_p7), %s307_s24, 128  }
  0x35   : > { %2602 = vsyncadd (%p2723_p7), %s307_s24, 4294967168  ;;  %v2629_v0 = vmov 0.0   ;;  %p368_p9 = scmp.lt.s32.totalorder %s2617_s21, 1  ;;  %v418_v1 = vld [vmem:[%s3161_s2 + $0x68] sm:$0xff]  ;;  %v417_v2 = vld [vmem:[%s3161_s2 + $0x60] sm:$0xff]  ;;  %vm424_vm0 = vcmask 261120   ;;  %v648_v54 = vlaneseq }
  0x36   : > { %492 = vmatprep.mubr.f32.mxu0 %v2629_v0  ;;  %563 = vmatprep.mubr.f32.mxu1 %v2629_v0  ;;  %v414_v3 = vld [vmem:[%s3161_s2 + $0x48] sm:$0xff]  ;;  %v413_v4 = vld [vmem:[%s3161_s2 + $0x40] sm:$0xff]  ;;  %v420_v7 = vld [vmem:[%s3161_s2 + $0x78] sm:$0xff]  ;;  %vm2630_vm1 = vmmov 0   ;;  %v2631_v22 = vmov 0   ;;  %s2633_s29 = smov 96  }
  0x37   : > { %s3177_s21 = smov (!%p368_p9, %s2617_s21), 1  ;;  %452 = vmatprep.subr.mxu0 %v418_v1  ;;  %v410_v5 = vld [vmem:[%s3161_s2 + $0x28] sm:$0xff]  ;;  %v409_v6 = vld [vmem:[%s3161_s2 + $0x20] sm:$0xff]  ;;  %v419_v8 = vld [vmem:[%s3161_s2 + $0x70] sm:$0xff]  ;;  %523 = vmatprep.subr.mxu1 %v420_v7  ;;  %s2634_s10 = smov 64   ;;  %v2635_v28 = vmov 1  }
  0x38   : > { %453 = vmatpush1.msra.mxu0 %v417_v2  ;;  %s2159_s6 = sshll.u32 %s3177_s21, 5  ;;  %v416_v9 = vld [vmem:[%s3161_s2 + $0x58] sm:$0xff]  ;;  %v406_v10 = vld [vmem:[%s3161_s2 + $0x8] sm:$0xff]  ;;  %v415_v11 = vld [vmem:[%s3161_s2 + $0x50] sm:$0xff]  ;;  %524 = vmatpush1.msra.mxu1 %v419_v8  ;;  %v2636_v29 = vmov 3   ;;  %v2637_v30 = vmov 2  }
  0x39   : > { %454 = vmatprep.subr.mxu0 %v414_v3  ;;  %v405_v12 = vld [vmem:[%s3161_s2] sm:$0xff]  ;;  %v412_v13 = vld [vmem:[%s3161_s2 + $0x38] sm:$0xff]  ;;  %s2836_s8 = scalar_lea.vmem %s3160_s1, %s2159_s6  ;;  %525 = vmatprep.subr.mxu1 %v416_v9  ;;  %v411_v15 = vld [vmem:[%s3161_s2 + $0x30] sm:$0xff]  ;;  %v2638_v31 = vmov 4   ;;  %v2639_v32 = vmov 6   ;;  %v2640_v33 = vmov 5  }
  0x3a   : > { %455 = vmatpush1.msra.mxu0 %v413_v4  ;;  %v400_v14 = vld [vmem:[%s2775_s18] sm:$0xff]  ;;  %526 = vmatpush1.msra.mxu1 %v415_v11  ;;  %v408_v16 = vld [vmem:[%s3161_s2 + $0x18] sm:$0xff]  ;;  %v407_v17 = vld [vmem:[%s3161_s2 + $0x10] sm:$0xff]  ;;  %s2632_s18 = smov 32   ;;  %v2641_v34 = vmov 9   ;;  %v2642_v35 = vmov 7  }
  0x3b   : > { %456 = vmatprep.subr.mxu0 %v410_v5  ;;  %527 = vmatprep.subr.mxu1 %v412_v13  ;;  %v2849_v18 = vld [vmem:[%s2836_s8 + $0x18] sm:$0xff]  ;;  %v2854_v19 = vld [vmem:[%s2836_s8 + $0x10] sm:$0xff]  ;;  %v2860_v20 = vld [vmem:[%s2836_s8 + $0x8] sm:$0xff]  ;;  %v2643_v36 = vmov 12   ;;  %v2644_v37 = vmov 8   ;;  %v2645_v38 = vmov 15  }
  0x3c   : > { %457 = vmatpush1.msra.mxu0 %v409_v6  ;;  %528 = vmatpush1.msra.mxu1 %v411_v15  ;;  %v2874_v21 = vld [vmem:[%s2836_s8] sm:$0xff]  ;;  %v421_v27 = vld [vmem:[%s2781_s27] sm:$0xff]  ;;  %v2646_v39 = vmov 10   ;;  %v2647_v40 = vmov 11   ;;  %v2648_v41 = vmov 13   ;;  %v2649_v42 = vmov 14  }
  0x3d   : > { %458 = vmatprep.subr.mxu0 %v406_v10  ;;  %529 = vmatprep.subr.mxu1 %v408_v16  ;;  %s2160_s27 = sshll.u32 %s3177_s21, 4  ;;  %v3058_v56 = vshrl.u32 %v648_v54, 7  ;;  %s2161_s11 = sshll.u32 %s3177_s21, 7  ;;  %vm653_vm2 = vcmask 64512  }
  0x3e   : > { %459 = vmatpush1.msra.mxu0 %v405_v12  ;;  %530 = vmatpush1.msra.mxu1 %v407_v17  ;;  %s3063_s17 = scalar_lea.vmem %s3163_s4, %s2160_s27  ;;  %s3073_s7 = scalar_lea.vmem %s3164_s5, %s2161_s11 }
  0x3f   : > { %2124 = vmatmul.mubr.msk.f32.vlgmr.msra.gmra.mxu0 %vm424_vm0, %v400_v14  ;;  %2242 = vmatprep.subr.mxu0 %v2629_v0  ;;  %v650_v57 = vsub.s32 0, %v3058_v56  ;;  %v422_v58 = vld [vmem:[%s3063_s17] sm:$0xff]  ;;  %v735_v1 = vsub.s32 1, %v3058_v56  ;;  %v820_v4 = vsub.s32 2, %v3058_v56  ;;  %v905_v11 = vsub.s32 3, %v3058_v56 }
  0x40   : > { %2243 = vmatpush3.msra.mxu0 %v2849_v18  ;;  %2125 = vmatmul.mubr.msk.f32.vlgmr.msra.gmra.mxu1 %vm424_vm0, %v400_v14 }
  0x41   : > { %2244 = vmatprep.subr.mxu0 %v2629_v0  ;;  %2253 = vmatprep.subr.mxu1 %v2629_v0  ;;  %v651_v60 = vrot.slane %v422_v58, %v650_v57  ;;  %v736_v3 = vrot.slane %v422_v58, %v735_v1  ;;  %v821_v10 = vrot.slane %v422_v58, %v820_v4 }
  0x42   : > { %2245 = vmatpush3.msra.mxu0 %v2854_v19  ;;  %2254 = vmatpush3.msra.mxu1 %v2849_v18  ;;  %v906_v17 = vrot.slane %v422_v58, %v905_v11 }
  0x43   : > { %2246 = vmatprep.subr.mxu0 %v2629_v0  ;;  %2255 = vmatprep.subr.mxu1 %v2629_v0 }
  0x44   : > { %2247 = vmatpush3.msra.mxu0 %v2860_v20  ;;  %2256 = vmatpush3.msra.mxu1 %v2854_v19 }
  0x45   : > { %2248 = vmatprep.subr.mxu0 %v2629_v0  ;;  %2257 = vmatprep.subr.mxu1 %v2629_v0 }
  0x46   : > { %2258 = vmatpush3.msra.mxu1 %v2860_v20  ;;  %2249 = vmatpush3.msra.mxu0 %v2874_v21 }
  0x47   : > { %2259 = vmatprep.subr.mxu1 %v2629_v0  ;;  %2250 = vmatprep.mubr.msk.f32.mxu0 %vm2630_vm1, %v2629_v0 }
  0x48   : > { %2264 = vmatprep.subr.mxu0 %v2629_v0  ;;  %2260 = vmatpush3.msra.mxu1 %v2874_v21 }
  0x49   : > { %2261 = vmatprep.mubr.msk.f32.mxu1 %vm2630_vm1, %v2629_v0  ;;  %2275 = vmatprep.subr.mxu1 %v2629_v0 }
  0x4a   : > { %2499 = vset.pattern.permute.xlu0 %v2631_v22  ;;  %2500 = vset.pattern.permute.xlu1 %v2635_v28 }
  0xff   : > { %v494_v23 = vpop.f32.mrf.mxu0 }
 0x100   : > { %829 = vrot.lane.b32.xlu1 %v494_v23, %s2632_s18  ;;  %659 = vrot.lane.b32.xlu0 %v494_v23, %s2633_s29  ;;  %v2897_v25 = vpop.f32.mrf.mxu1 }
 0x101   : > { %2251 = vmatmul.mubr.msk.f32.vlgmr.msra.gmra.mxu0 %vm424_vm0, %v494_v23  ;;  %v2888_v24 = vpop.f32.mrf.mxu0 }
 0x102   : > { %2265 = vmatpush3.msra.mxu0 %v2849_v18  ;;  %2272 = vmatprep.mubr.msk.f32.mxu0 %vm2630_vm1, %v2629_v0  ;;  %v2904_v26 = vpop.f32.mrf.mxu1 }
 0x103   : > { %2266 = vmatprep.subr.mxu0 %v2629_v0 }
 0x104   : > { %744 = vrot.lane.b32.xlu0 %v494_v23, %s2634_s10  ;;  %998 = vrot.lane.b32.xlu1 %v2888_v24, %s2633_s29 }
 0x105   : > { %2267 = vmatpush3.msra.mxu0 %v2854_v19 }
 0x106   : > { %2268 = vmatprep.subr.mxu0 %v2629_v0 }
 0x107   : > { %2269 = vmatpush3.msra.mxu0 %v2860_v20 }
 0x108   : > { %1083 = vrot.lane.b32.xlu0 %v2888_v24, %s2634_s10  ;;  %1168 = vrot.lane.b32.xlu1 %v2888_v24, %s2632_s18 }
 0x109   : > { %2270 = vmatprep.subr.mxu0 %v2629_v0 }
 0x10a   : > { %2271 = vmatpush3.msra.mxu0 %v2874_v21 }
 0x10b   : > { %2286 = vmatprep.subr.mxu0 %v2629_v0 }
 0x10c   : > { %1337 = vrot.lane.b32.xlu0 %v2897_v25, %s2633_s29  ;;  %1422 = vrot.lane.b32.xlu1 %v2897_v25, %s2634_s10 }
 0x110   : > { %1507 = vrot.lane.b32.xlu0 %v2897_v25, %s2632_s18  ;;  %1676 = vrot.lane.b32.xlu1 %v2904_v26, %s2633_s29 }
 0x114   : > { %1761 = vrot.lane.b32.xlu0 %v2904_v26, %s2634_s10  ;;  %1846 = vrot.lane.b32.xlu1 %v2904_v26, %s2632_s18 }
 0x118   : > { %572 = vperm.xlu0 %2499, %v421_v27   ;;  %656 = vperm.xlu1 %2500, %v421_v27  }
 0x11c   : > { %2502 = vset.pattern.permute.xlu0 %v2636_v29  ;;  %2501 = vset.pattern.permute.xlu1 %v2637_v30 }
 0x11d   : > { %826 = vperm.xlu0 %2502, %v421_v27   ;;  %741 = vperm.xlu1 %2501, %v421_v27  }
 0x121   : > { %2503 = vset.pattern.permute.xlu1 %v2638_v31  ;;  %2505 = vset.pattern.permute.xlu0 %v2639_v32 }
 0x122   : > { %911 = vperm.xlu1 %2503, %v421_v27   ;;  %1080 = vperm.xlu0 %2505, %v421_v27  }
 0x126   : > { %2504 = vset.pattern.permute.xlu1 %v2640_v33  ;;  %2508 = vset.pattern.permute.xlu0 %v2641_v34  ;;  %v1159_v33 = vsub.s32 6, %v3058_v56 }
 0x127   : > { %995 = vperm.xlu1 %2504, %v421_v27   ;;  %1334 = vperm.xlu0 %2508, %v421_v27  }
 0x12b   : > { %2506 = vset.pattern.permute.xlu1 %v2642_v35  ;;  %2511 = vset.pattern.permute.xlu0 %v2643_v36 }
 0x12c   : > { %1165 = vperm.xlu1 %2506, %v421_v27   ;;  %1589 = vperm.xlu0 %2511, %v421_v27  }
 0x130   : > { %2507 = vset.pattern.permute.xlu1 %v2644_v37  ;;  %2514 = vset.pattern.permute.xlu0 %v2645_v38  ;;  %v1160_v38 = vrot.slane %v422_v58, %v1159_v33 }
 0x131   : > { %1250 = vperm.xlu1 %2507, %v421_v27   ;;  %1843 = vperm.xlu0 %2514, %v421_v27  }
 0x135   : > { %2509 = vset.pattern.permute.xlu1 %v2646_v39 }
 0x136   : > { %1419 = vperm.xlu1 %2509, %v421_v27  }
 0x13a   : > { %2510 = vset.pattern.permute.xlu1 %v2647_v40  ;;  %v1244_v40 = vsub.s32 7, %v3058_v56 }
 0x13b   : > { %1504 = vperm.xlu1 %2510, %v421_v27  }
 0x13f   : > { %2512 = vset.pattern.permute.xlu1 %v2648_v41 }
 0x140   : > { %1673 = vperm.xlu1 %2512, %v421_v27  }
 0x144   : > { %2513 = vset.pattern.permute.xlu1 %v2649_v42 }
 0x145   : > { %1758 = vperm.xlu1 %2513, %v421_v27  }
 0x172   : > { %v660_v43 = vpop.permute.xlu0 %659  ;;  %v830_v45 = vpop.permute.xlu1 %829 }
 0x173   : > { %2262 = vmatmul.mubr.msk.f32.vlgmr.msra.gmra.mxu1 %vm424_vm0, %v660_v43 }
 0x174   : > { %2276 = vmatpush3.msra.mxu1 %v2849_v18  ;;  %2283 = vmatprep.mubr.msk.f32.mxu1 %vm2630_vm1, %v2629_v0 }
 0x175   : > { %2277 = vmatprep.subr.mxu1 %v2629_v0 }
 0x176   : > { %2278 = vmatpush3.msra.mxu1 %v2854_v19  ;;  %v745_v44 = vpop.permute.xlu0 %744  ;;  %v999_v46 = vpop.permute.xlu1 %998 }
 0x177   : > { %2279 = vmatprep.subr.mxu1 %v2629_v0  ;;  %2273 = vmatmul.mubr.msk.f32.vlgmr.msra.gmra.mxu0 %vm424_vm0, %v745_v44 }
 0x178   : > { %2280 = vmatpush3.msra.mxu1 %v2860_v20  ;;  %2287 = vmatpush3.msra.mxu0 %v2849_v18 }
 0x179   : > { %2281 = vmatprep.subr.mxu1 %v2629_v0  ;;  %2288 = vmatprep.subr.mxu0 %v2629_v0 }
 0x17a   : > { %2282 = vmatpush3.msra.mxu1 %v2874_v21  ;;  %2289 = vmatpush3.msra.mxu0 %v2854_v19  ;;  %v1084_v47 = vpop.permute.xlu0 %1083  ;;  %v1169_v48 = vpop.permute.xlu1 %1168 }
 0x17b   : > { %2284 = vmatmul.mubr.msk.f32.vlgmr.msra.gmra.mxu1 %vm424_vm0, %v830_v45  ;;  %2290 = vmatprep.subr.mxu0 %v2629_v0  ;;  %v1245_v45 = vrot.slane %v422_v58, %v1244_v40 }
 0x17c   : > { %2297 = vmatprep.subr.mxu1 %v2629_v0  ;;  %2291 = vmatpush3.msra.mxu0 %v2860_v20 }
 0x17d   : > { %2298 = vmatpush3.msra.mxu1 %v2849_v18  ;;  %2292 = vmatprep.subr.mxu0 %v2629_v0 }
 0x17e   : > { %2299 = vmatprep.subr.mxu1 %v2629_v0  ;;  %2293 = vmatpush3.msra.mxu0 %v2874_v21  ;;  %v1338_v49 = vpop.permute.xlu0 %1337  ;;  %v1423_v50 = vpop.permute.xlu1 %1422 }
 0x17f   : > { %2294 = vmatprep.mubr.msk.f32.mxu0 %vm2630_vm1, %v2629_v0  ;;  %2300 = vmatpush3.msra.mxu1 %v2854_v19 }
 0x180   : > { %2295 = vmatmul.mubr.msk.f32.vlgmr.msra.gmra.mxu0 %vm424_vm0, %v2888_v24  ;;  %2301 = vmatprep.subr.mxu1 %v2629_v0 }
 0x181   : > { %2308 = vmatprep.subr.mxu0 %v2629_v0  ;;  %2302 = vmatpush3.msra.mxu1 %v2860_v20 }
 0x182   : > { %2309 = vmatpush3.msra.mxu0 %v2849_v18  ;;  %2303 = vmatprep.subr.mxu1 %v2629_v0  ;;  %v1508_v51 = vpop.permute.xlu0 %1507  ;;  %v1677_v52 = vpop.permute.xlu1 %1676 }
 0x183   : > { %2310 = vmatprep.subr.mxu0 %v2629_v0  ;;  %2304 = vmatpush3.msra.mxu1 %v2874_v21 }
 0x184   : > { %2305 = vmatprep.mubr.msk.f32.mxu1 %vm2630_vm1, %v2629_v0  ;;  %2311 = vmatpush3.msra.mxu0 %v2854_v19 }
 0x185   : > { %2306 = vmatmul.mubr.msk.f32.vlgmr.msra.gmra.mxu1 %vm424_vm0, %v999_v46  ;;  %2312 = vmatprep.subr.mxu0 %v2629_v0 }
 0x186   : > { %2319 = vmatprep.subr.mxu1 %v2629_v0  ;;  %2313 = vmatpush3.msra.mxu0 %v2860_v20  ;;  %v1762_v53 = vpop.permute.xlu0 %1761  ;;  %v1847_v55 = vpop.permute.xlu1 %1846 }
 0x187   : > { %2320 = vmatpush3.msra.mxu1 %v2849_v18  ;;  %2314 = vmatprep.subr.mxu0 %v2629_v0 }
 0x188   : > { %2321 = vmatprep.subr.mxu1 %v2629_v0  ;;  %2315 = vmatpush3.msra.mxu0 %v2874_v21 }
 0x189   : > { %2316 = vmatprep.mubr.msk.f32.mxu0 %vm2630_vm1, %v2629_v0  ;;  %2322 = vmatpush3.msra.mxu1 %v2854_v19 }
 0x18a   : > { %2317 = vmatmul.mubr.msk.f32.vlgmr.msra.gmra.mxu0 %vm424_vm0, %v1084_v47  ;;  %2323 = vmatprep.subr.mxu1 %v2629_v0 }
 0x18b   : > { %2330 = vmatprep.subr.mxu0 %v2629_v0  ;;  %2324 = vmatpush3.msra.mxu1 %v2860_v20 }
 0x18c   : > { %2331 = vmatpush3.msra.mxu0 %v2849_v18  ;;  %2325 = vmatprep.subr.mxu1 %v2629_v0 }
 0x18d   : > { %2332 = vmatprep.subr.mxu0 %v2629_v0  ;;  %2326 = vmatpush3.msra.mxu1 %v2874_v21 }
 0x18e   : > { %2327 = vmatprep.mubr.msk.f32.mxu1 %vm2630_vm1, %v2629_v0  ;;  %2333 = vmatpush3.msra.mxu0 %v2854_v19 }
 0x18f   : > { %2328 = vmatmul.mubr.msk.f32.vlgmr.msra.gmra.mxu1 %vm424_vm0, %v1169_v48  ;;  %2341 = vmatprep.subr.mxu1 %v2629_v0  ;;  %v423_v48 = vld [vmem:[%s3063_s17 + $0x8] sm:$0xff] }
 0x190   : > { %2334 = vmatprep.subr.mxu0 %v2629_v0  ;;  %2342 = vmatpush3.msra.mxu1 %v2849_v18 }
 0x191   : > { %2335 = vmatpush3.msra.mxu0 %v2860_v20  ;;  %2343 = vmatprep.subr.mxu1 %v2629_v0 }
 0x192   : > { %2336 = vmatprep.subr.mxu0 %v2629_v0  ;;  %2338 = vmatprep.mubr.msk.f32.mxu0 %vm2630_vm1, %v2629_v0 }
 0x193   : > { %2337 = vmatpush3.msra.mxu0 %v2874_v21  ;;  %2344 = vmatpush3.msra.mxu1 %v2854_v19  ;;  %v573_v59 = vpop.permute.xlu0 %572  ;;  %v657_v2 = vpop.permute.xlu1 %656 }
 0x194   : > { %2345 = vmatprep.subr.mxu1 %v2629_v0  ;;  %2339 = vmatmul.mubr.msk.f32.vlgmr.msra.gmra.mxu0 %vm424_vm0, %v2897_v25 }
 0x195   : > { %2352 = vmatprep.subr.mxu0 %v2629_v0  ;;  %2346 = vmatpush3.msra.mxu1 %v2860_v20 }
 0x196   : > { %2353 = vmatpush3.msra.mxu0 %v2849_v18  ;;  %2347 = vmatprep.subr.mxu1 %v2629_v0 }
 0x197   : > { %2354 = vmatprep.subr.mxu0 %v2629_v0  ;;  %2348 = vmatpush3.msra.mxu1 %v2874_v21 }
 0x198   : > { %2349 = vmatprep.mubr.msk.f32.mxu1 %vm2630_vm1, %v2629_v0  ;;  %2355 = vmatpush3.msra.mxu0 %v2854_v19  ;;  %v742_v8 = vpop.permute.xlu1 %741  ;;  %v827_v15 = vpop.permute.xlu0 %826 }
 0x199   : > { %2350 = vmatmul.mubr.msk.f32.vlgmr.msra.gmra.mxu1 %vm424_vm0, %v1338_v49  ;;  %2363 = vmatprep.subr.mxu1 %v2629_v0 }
 0x19a   : > { %2356 = vmatprep.subr.mxu0 %v2629_v0  ;;  %2364 = vmatpush3.msra.mxu1 %v2849_v18 }
 0x19b   : > { %2357 = vmatpush3.msra.mxu0 %v2860_v20  ;;  %2365 = vmatprep.subr.mxu1 %v2629_v0 }
 0x19c   : > { %2358 = vmatprep.subr.mxu0 %v2629_v0  ;;  %2360 = vmatprep.mubr.msk.f32.mxu0 %vm2630_vm1, %v2629_v0 }
 0x19d   : > { %2359 = vmatpush3.msra.mxu0 %v2874_v21  ;;  %2366 = vmatpush3.msra.mxu1 %v2854_v19  ;;  %v912_v22 = vpop.permute.xlu1 %911  ;;  %v1081_v37 = vpop.permute.xlu0 %1080 }
 0x19e   : > { %2361 = vmatmul.mubr.msk.f32.vlgmr.msra.gmra.mxu0 %vm424_vm0, %v1423_v50  ;;  %2367 = vmatprep.subr.mxu1 %v2629_v0 }
 0x19f   : > { %2374 = vmatprep.subr.mxu0 %v2629_v0  ;;  %2368 = vmatpush3.msra.mxu1 %v2860_v20 }
 0x1a0   : > { %2375 = vmatpush3.msra.mxu0 %v2849_v18  ;;  %2369 = vmatprep.subr.mxu1 %v2629_v0 }
 0x1a1   : > { %2376 = vmatprep.subr.mxu0 %v2629_v0  ;;  %2370 = vmatpush3.msra.mxu1 %v2874_v21 }
 0x1a2   : > { %2371 = vmatprep.mubr.msk.f32.mxu1 %vm2630_vm1, %v2629_v0  ;;  %2377 = vmatpush3.msra.mxu0 %v2854_v19  ;;  %v996_v30 = vpop.permute.xlu1 %995 }
 0x1a3   : > { %2372 = vmatmul.mubr.msk.f32.vlgmr.msra.gmra.mxu1 %vm424_vm0, %v1508_v51  ;;  %2378 = vmatprep.subr.mxu0 %v2629_v0 }
 0x1a4   : > { %2385 = vmatprep.subr.mxu1 %v2629_v0  ;;  %2379 = vmatpush3.msra.mxu0 %v2860_v20 }
 0x1a5   : > { %2386 = vmatpush3.msra.mxu1 %v2849_v18  ;;  %2380 = vmatprep.subr.mxu0 %v2629_v0 }
 0x1a6   : > { %2387 = vmatprep.subr.mxu1 %v2629_v0  ;;  %2381 = vmatpush3.msra.mxu0 %v2874_v21 }
 0x1a7   : > { %2382 = vmatprep.mubr.msk.f32.mxu0 %vm2630_vm1, %v2629_v0  ;;  %2388 = vmatpush3.msra.mxu1 %v2854_v19  ;;  %v1166_v43 = vpop.permute.xlu1 %1165 }
 0x1a8   : > { %2383 = vmatmul.mubr.msk.f32.vlgmr.msra.gmra.mxu0 %vm424_vm0, %v2904_v26  ;;  %2389 = vmatprep.subr.mxu1 %v2629_v0  ;;  %v1074_v26 = vsub.s32 5, %v3058_v56 }
 0x1a9   : > { %2396 = vmatprep.subr.mxu0 %v2629_v0  ;;  %2390 = vmatpush3.msra.mxu1 %v2860_v20 }
 0x1aa   : > { %2397 = vmatpush3.msra.mxu0 %v2849_v18  ;;  %2391 = vmatprep.subr.mxu1 %v2629_v0  ;;  %v1075_v31 = vrot.slane %v422_v58, %v1074_v26 }
 0x1ab   : > { %2398 = vmatprep.subr.mxu0 %v2629_v0  ;;  %2392 = vmatpush3.msra.mxu1 %v2874_v21 }
 0x1ac   : > { %2393 = vmatprep.mubr.msk.f32.mxu1 %vm2630_vm1, %v2629_v0  ;;  %2399 = vmatpush3.msra.mxu0 %v2854_v19  ;;  %v1251_v51 = vpop.permute.xlu1 %1250 }
 0x1ad   : > { %2394 = vmatmul.mubr.msk.f32.vlgmr.msra.gmra.mxu1 %vm424_vm0, %v1677_v52  ;;  %2400 = vmatprep.subr.mxu0 %v2629_v0  ;;  %v1329_v52 = vrot.slane %v423_v48, %v650_v57  ;;  %v1499_v57 = vrot.slane %v423_v48, %v820_v4 }
 0x1ae   : > { %2407 = vmatprep.subr.mxu1 %v2629_v0  ;;  %2401 = vmatpush3.msra.mxu0 %v2860_v20 }
 0x1af   : > { %2408 = vmatpush3.msra.mxu1 %v2849_v18  ;;  %2402 = vmatprep.subr.mxu0 %v2629_v0 }
 0x1b0   : > { %2409 = vmatprep.subr.mxu1 %v2629_v0  ;;  %2403 = vmatpush3.msra.mxu0 %v2874_v21 }
 0x1b1   : > { %2404 = vmatprep.mubr.msk.f32.mxu0 %vm2630_vm1, %v2629_v0  ;;  %2410 = vmatpush3.msra.mxu1 %v2854_v19  ;;  %v989_v19 = vsub.s32 4, %v3058_v56 }
 0x1b2   : > { %2405 = vmatmul.mubr.msk.f32.vlgmr.msra.gmra.mxu0 %vm424_vm0, %v1762_v53  ;;  %2411 = vmatprep.subr.mxu1 %v2629_v0 }
 0x1b3   : > { %2412 = vmatpush3.msra.mxu1 %v2860_v20  ;;  %2415 = vmatprep.mubr.msk.f32.mxu1 %vm2630_vm1, %v2629_v0  ;;  %v990_v24 = vrot.slane %v422_v58, %v989_v19  ;;  %v1335_v58 = vpop.permute.xlu0 %1334  ;;  %v1668_v4 = vrot.slane %v423_v48, %v989_v19  ;;  %v1838_v19 = vrot.slane %v423_v48, %v1159_v33 }
 0x1b4   : > { %2413 = vmatprep.subr.mxu1 %v2629_v0 }
 0x1b5   : > { %2414 = vmatpush3.msra.mxu1 %v2874_v21 }
 0x1b6   : > { %2416 = vmatmul.mubr.msk.f32.vlgmr.msra.gmra.mxu1 %vm424_vm0, %v1847_v55 }
 0x1c1   : > { %v644_v61 = vpop.f32.mrf.mxu0 }
 0x1c2   : > { %v645_v62 = vadd.f32 %v644_v61, %v573_v59 }
 0x1c3   : > { %v2252_v63 = vpop.f32.mrf.mxu0 }
 0x1c4   : > { %v652_v0 = vadd.f32 %v651_v60, %v645_v62  ;;  %v1414_v60 = vrot.slane %v423_v48, %v735_v1  ;;  %v1584_v1 = vrot.slane %v423_v48, %v905_v11  ;;  %v1753_v11 = vrot.slane %v423_v48, %v1074_v26 }
 0x1c5   : > { %v1923_v26 = vrot.slane %v423_v48, %v1244_v40 }
 0x1c6   : > { %654 = vst.msk [vmem:[%s3073_s7] sm:$0xff] %vm653_vm2, %v652_v0  ;;  %v1420_v0 = vpop.permute.xlu1 %1419 }
 0x233   : > { %v729_v5 = vpop.f32.mrf.mxu1 }
 0x234   : > { %v730_v6 = vadd.f32 %v729_v5, %v657_v2 }
 0x235   : > { %v2263_v7 = vpop.f32.mrf.mxu1 }
 0x236   : > { %v737_v9 = vadd.f32 %v736_v3, %v730_v6 }
 0x237   : > { %v814_v12 = vpop.f32.mrf.mxu0 }
 0x238   : > { %2128 = vst.msk [vmem:[%s3073_s7 + $0x8] sm:$0xff] %vm653_vm2, %v737_v9  ;;  %v815_v13 = vadd.f32 %v814_v12, %v742_v8  ;;  %v1505_v8 = vpop.permute.xlu1 %1504 }
 0x239   : > { %v2274_v14 = vpop.f32.mrf.mxu0 }
 0x23a   : > { %v822_v16 = vadd.f32 %v821_v10, %v815_v13  ;;  %v1590_v14 = vpop.permute.xlu0 %1589 }
 0x23b   : > { %v899_v18 = vpop.f32.mrf.mxu1 }
 0x23c   : > { %2130 = vst.msk [vmem:[%s3073_s7 + $0x10] sm:$0xff] %vm653_vm2, %v822_v16  ;;  %v900_v20 = vadd.f32 %v899_v18, %v827_v15  ;;  %v1674_v18 = vpop.permute.xlu1 %1673 }
 0x23d   : > { %v2285_v21 = vpop.f32.mrf.mxu1 }
 0x23e   : > { %v907_v23 = vadd.f32 %v906_v17, %v900_v20 }
 0x240   : > { %2132 = vst.msk [vmem:[%s3073_s7 + $0x18] sm:$0xff] %vm653_vm2, %v907_v23  ;;  %v983_v25 = vpop.f32.mrf.mxu0 }
 0x241   : > { %v984_v27 = vadd.f32 %v983_v25, %v912_v22  ;;  %v1759_v25 = vpop.permute.xlu1 %1758 }
 0x242   : > { %v2296_v28 = vpop.f32.mrf.mxu0 }
 0x243   : > { %v991_v29 = vadd.f32 %v990_v24, %v984_v27 }
 0x245   : > { %2134 = vst.msk [vmem:[%s3073_s7 + $0x20] sm:$0xff] %vm653_vm2, %v991_v29  ;;  %v1068_v32 = vpop.f32.mrf.mxu1 }
 0x246   : > { %v1069_v34 = vadd.f32 %v1068_v32, %v996_v30  ;;  %v1844_v30 = vpop.permute.xlu0 %1843 }
 0x247   : > { %v2307_v35 = vpop.f32.mrf.mxu1 }
 0x248   : > { %v1076_v36 = vadd.f32 %v1075_v31, %v1069_v34 }
 0x24a   : > { %2136 = vst.msk [vmem:[%s3073_s7 + $0x28] sm:$0xff] %vm653_vm2, %v1076_v36  ;;  %v1153_v39 = vpop.f32.mrf.mxu0 }
 0x24b   : > { %v1154_v41 = vadd.f32 %v1153_v39, %v1081_v37 }
 0x24c   : > { %v2318_v42 = vpop.f32.mrf.mxu0 }
 0x24d   : > { %v1161_v44 = vadd.f32 %v1160_v38, %v1154_v41 }
 0x24f   : > { %2138 = vst.msk [vmem:[%s3073_s7 + $0x30] sm:$0xff] %vm653_vm2, %v1161_v44  ;;  %v1238_v46 = vpop.f32.mrf.mxu1 }
 0x250   : > { %v1239_v47 = vadd.f32 %v1238_v46, %v1166_v43 }
 0x251   : > { %v2329_v49 = vpop.f32.mrf.mxu1 }
 0x252   : > { %v1246_v50 = vadd.f32 %v1245_v45, %v1239_v47 }
 0x254   : > { %2140 = vst.msk [vmem:[%s3073_s7 + $0x38] sm:$0xff] %vm653_vm2, %v1246_v50  ;;  %v1322_v53 = vpop.f32.mrf.mxu0 }
 0x255   : > { %v1323_v54 = vadd.f32 %v1322_v53, %v1251_v51 }
 0x256   : > { %v2340_v55 = vpop.f32.mrf.mxu0 }
 0x257   : > { %v1330_v59 = vadd.f32 %v1329_v52, %v1323_v54 }
 0x259   : > { %2142 = vst.msk [vmem:[%s3073_s7 + $0x40] sm:$0xff] %vm653_vm2, %v1330_v59  ;;  %v1407_v61 = vpop.f32.mrf.mxu1 }
 0x25a   : > { %v1408_v62 = vadd.f32 %v1407_v61, %v1335_v58 }
 0x25b   : > { %v2351_v63 = vpop.f32.mrf.mxu1 }
 0x25c   : > { %v1415_v2 = vadd.f32 %v1414_v60, %v1408_v62 }
 0x25e   : > { %2144 = vst.msk [vmem:[%s3073_s7 + $0x48] sm:$0xff] %vm653_vm2, %v1415_v2  ;;  %v1492_v3 = vpop.f32.mrf.mxu0 }
 0x25f   : > { %v1493_v5 = vadd.f32 %v1492_v3, %v1420_v0 }
 0x260   : > { %v2362_v6 = vpop.f32.mrf.mxu0 }
 0x261   : > { %v1500_v7 = vadd.f32 %v1499_v57, %v1493_v5 }
 0x263   : > { %2146 = vst.msk [vmem:[%s3073_s7 + $0x50] sm:$0xff] %vm653_vm2, %v1500_v7  ;;  %v1577_v9 = vpop.f32.mrf.mxu1 }
 0x264   : > { %v1578_v10 = vadd.f32 %v1577_v9, %v1505_v8 }
 0x265   : > { %v2373_v12 = vpop.f32.mrf.mxu1 }
 0x266   : > { %v1585_v13 = vadd.f32 %v1584_v1, %v1578_v10 }
 0x268   : > { %2148 = vst.msk [vmem:[%s3073_s7 + $0x58] sm:$0xff] %vm653_vm2, %v1585_v13  ;;  %v1661_v15 = vpop.f32.mrf.mxu0 }
 0x269   : > { %v1662_v16 = vadd.f32 %v1661_v15, %v1590_v14 }
 0x26a   : > { %v2384_v17 = vpop.f32.mrf.mxu0 }
 0x26b   : > { %v1669_v20 = vadd.f32 %v1668_v4, %v1662_v16 }
 0x26d   : > { %2150 = vst.msk [vmem:[%s3073_s7 + $0x60] sm:$0xff] %vm653_vm2, %v1669_v20  ;;  %v1746_v21 = vpop.f32.mrf.mxu1 }
 0x26e   : > { %v1747_v22 = vadd.f32 %v1746_v21, %v1674_v18 }
 0x26f   : > { %v2395_v23 = vpop.f32.mrf.mxu1 }
 0x270   : > { %v1754_v24 = vadd.f32 %v1753_v11, %v1747_v22 }
 0x272   : > { %2152 = vst.msk [vmem:[%s3073_s7 + $0x68] sm:$0xff] %vm653_vm2, %v1754_v24  ;;  %v1831_v27 = vpop.f32.mrf.mxu0 }
 0x273   : > { %v1832_v28 = vadd.f32 %v1831_v27, %v1759_v25 }
 0x274   : > { %v2406_v29 = vpop.f32.mrf.mxu0 }
 0x275   : > { %v1839_v31 = vadd.f32 %v1838_v19, %v1832_v28 }
 0x276   : > { %v1916_v32 = vpop.f32.mrf.mxu1 }
 0x277   : > { %2154 = vst.msk [vmem:[%s3073_s7 + $0x70] sm:$0xff] %vm653_vm2, %v1839_v31  ;;  %v1917_v34 = vadd.f32 %v1916_v32, %v1844_v30 }
 0x278   : > { %v2417_v35 = vpop.f32.mrf.mxu1 }
 0x279   : > { %v1924_v36 = vadd.f32 %v1923_v26, %v1917_v34 }
 0x27b   : > { %2156 = vst.msk [vmem:[%s3073_s7 + $0x78] sm:$0xff] %vm653_vm2, %v1924_v36 }
 0x27c PF: > { %s21_s23 = sadd.s32 1, %s2625_s23   ;;  %s3169_s18 = smov %s2609_s19 }
 0x27d   : > { %p18_p7 = scmp.ge.s32.totalorder %s21_s23, 4   ;;  %s3170_s19 = smov %s2613_s20 }
 0x27e   : > { %s3171_s20 = smov %s2729_s30  ;;  %s3172_s21 = smov %s2621_s22 }
 0x27f   : > { %s3173_s22 = smov %s3175_s25  ;;  %20 = sbr.rel (!%p18_p7) target bundleno = 6 (0x6), region = 117 }
 0x284   :  { %1963 = vsyncpa [#allocation3], 1 }
 0x285   :  { %1965 = vsyncpa [#allocation3 + $0x1], 1 }
 0x286   :  { %1966 = vsyncpa [#allocation5], 1 }
 0x287   :  { %1968 = vsyncpa [#allocation5 + $0x1], 1 }

</bundles_post_ra>
